<compile_context>
chip_gen: v7x
topology: tpu7x:2x2x1
jax: 0.10.0
libtpu: 0.0.40
codegen_flags: <defaults>
</compile_context>

<pallas_src>
import functools

import jax
import jax.numpy as jnp
from jax.experimental import pallas as pl
from jax.experimental.pallas import tpu as pltpu

TK_MAX = 4096   # K (reduction) tile upper bound
TM_MAX = 512    # batch tile upper bound


def _round_up(x, m):
    return ((x + m - 1) // m) * m


def encoder_kernel(x_ref, wb_ref, bb_ref, w1_ref, b1_ref, w2_ref, b2_ref,
                   gamma_ref, beta_ref, out_ref, acc_ref):
    k = pl.program_id(1)

    # ---- accumulator init ----
    @pl.when(k == 0)
    def _():
        acc_ref[...] = jnp.zeros_like(acc_ref)

    # ---- stand-in backbone: linear feature extractor (bf16 operands, f32 accumulate) ----
    acc_ref[...] += jnp.dot(x_ref[...], wb_ref[...],
                            preferred_element_type=jnp.float32)

    # ---- fused epilogue on the last K step ----
    @pl.when(k == pl.num_programs(1) - 1)
    def _():
        # backbone bias added once here (cheaper than a broadcast RMW on k==0)
        feat = acc_ref[...] + bb_ref[...]                           # f32 [TM, feature_dim]

        # ProjectionHead.fc1 + ReLU (bf16 MXU, f32 accumulate / elementwise)
        h = jnp.dot(feat.astype(jnp.bfloat16), w1_ref[...],
                    preferred_element_type=jnp.float32) + b1_ref[...]
        h = jnp.maximum(h, 0.0)

        # ProjectionHead.fc2
        z = jnp.dot(h.astype(jnp.bfloat16), w2_ref[...],
                    preferred_element_type=jnp.float32) + b2_ref[...]

        # LayerNorm (eps=1e-5, biased variance, two-pass for numerical stability)
        mean = jnp.mean(z, axis=-1, keepdims=True)
        zc = z - mean
        var = jnp.mean(zc * zc, axis=-1, keepdims=True)
        zn = zc * jax.lax.rsqrt(var + 1e-5)
        zn = zn * gamma_ref[...] + beta_ref[...]

        # ReLU
        zn = jnp.maximum(zn, 0.0)

        # F.normalize(p=2, dim=1), eps=1e-12  ->  zn * rsqrt(max(||zn||^2, eps^2))
        l2sq = jnp.sum(zn * zn, axis=-1, keepdims=True)
        out_ref[...] = (zn * jax.lax.rsqrt(jnp.maximum(l2sq, 1e-24))).astype(out_ref.dtype)


def prepare_encoder_params(params):
    """One-time weight prep (bf16 casts + K padding), hoisted out of the forward path."""
    wb, bb, w1, b1, w2, b2, gamma, beta = params
    d_in, feature_dim = wb.shape

    tk = min(TK_MAX, _round_up(d_in, 128))
    k_pad = _round_up(d_in, tk)

    wb_p = jnp.zeros((k_pad, feature_dim), jnp.bfloat16).at[:d_in, :].set(
        wb.astype(jnp.bfloat16))
    return (wb_p, bb, w1.astype(jnp.bfloat16), b1, w2.astype(jnp.bfloat16),
            b2, gamma, beta)


@functools.partial(jax.jit, static_argnames=("tm",))
def encoder_forward(x_nchw, prepared, *, tm=TM_MAX):
    wb_p, bb, w1_b, b1, w2_b, b2, gamma, beta = prepared

    B = x_nchw.shape[0]
    x_flat = x_nchw.reshape(B, -1)
    d_in = x_flat.shape[1]

    k_pad, feature_dim = wb_p.shape
    hidden_dim = w1_b.shape[1]
    out_dim = w2_b.shape[1]

    # K tile: same rule as prepare_encoder_params (k_pad is a multiple of it by construction).
    tk = min(TK_MAX, k_pad)
    # Batch tile: only pad small batches to the 8-row sublane boundary, not to 128.
    tm_eff = min(tm, _round_up(B, 8))
    b_pad = _round_up(B, tm_eff)

    # bf16 matmul operand for x (f32 epilogue); zero-pad batch/K dims.
    x_p = jnp.zeros((b_pad, k_pad), jnp.bfloat16).at[:B, :d_in].set(
        x_flat.astype(jnp.bfloat16))

    n_btiles = b_pad // tm_eff
    grid = (n_btiles, k_pad // tk)

    flops = 2 * b_pad * (k_pad * feature_dim
                         + feature_dim * hidden_dim
                         + hidden_dim * out_dim)
    # wb is re-streamed once per batch tile; small params are f32.
    bytes_accessed = (x_p.size * 2
                      + n_btiles * wb_p.size * 2
                      + (w1_b.size + w2_b.size) * 2
                      + (bb.size + b1.size + b2.size + gamma.size + beta.size) * 4
                      + b_pad * out_dim * 4)
    cost = pl.CostEstimate(flops=flops, transcendentals=2 * b_pad,
                           bytes_accessed=bytes_accessed)

    out_pad = pl.pallas_call(
        encoder_kernel,
        out_shape=jax.ShapeDtypeStruct((b_pad, out_dim), jnp.float32),
        grid_spec=pltpu.PrefetchScalarGridSpec(
            num_scalar_prefetch=0,
            grid=grid,
            in_specs=[
                pl.BlockSpec((tm_eff, tk), lambda i, k: (i, k)),               # x tile
                pl.BlockSpec((tk, feature_dim), lambda i, k: (k, 0)),          # backbone W tile
                pl.BlockSpec((1, feature_dim), lambda i, k: (0, 0)),           # backbone bias
                pl.BlockSpec((feature_dim, hidden_dim), lambda i, k: (0, 0)),  # fc1 W (resident)
                pl.BlockSpec((1, hidden_dim), lambda i, k: (0, 0)),            # fc1 bias
                pl.BlockSpec((hidden_dim, out_dim), lambda i, k: (0, 0)),      # fc2 W (resident)
                pl.BlockSpec((1, out_dim), lambda i, k: (0, 0)),               # fc2 bias
                pl.BlockSpec((1, out_dim), lambda i, k: (0, 0)),               # LayerNorm gamma
                pl.BlockSpec((1, out_dim), lambda i, k: (0, 0)),               # LayerNorm beta
            ],
            out_specs=pl.BlockSpec((tm_eff, out_dim), lambda i, k: (i, 0)),
            scratch_shapes=[pltpu.VMEM((tm_eff, feature_dim), jnp.float32)],
        ),
        compiler_params=pltpu.CompilerParams(
            dimension_semantics=("parallel", "arbitrary"),
            # ~14 MiB double-buffered working set at tm=512/tk=4096; 48 MiB keeps
            # headroom and stays under v7x's 64 MiB/TC physical VMEM.
            vmem_limit_bytes=48 * 1024 * 1024,
        ),
        cost_estimate=cost,
    )(x_p, wb_p, bb, w1_b, b1, w2_b, b2, gamma, beta)

    return out_pad[:B]


def encoder_reference(x_nchw, params):
    """Pure-JAX f32 reference matching the PyTorch module semantics."""
    wb, bb, w1, b1, w2, b2, gamma, beta = params
    x = x_nchw.reshape(x_nchw.shape[0], -1).astype(jnp.float32)
    feat = x @ wb + bb
    h = jnp.maximum(feat @ w1 + b1, 0.0)
    z = h @ w2 + b2
    mean = jnp.mean(z, axis=-1, keepdims=True)
    var = jnp.mean((z - mean) ** 2, axis=-1, keepdims=True)
    zn = (z - mean) / jnp.sqrt(var + 1e-5) * gamma + beta
    zn = jnp.maximum(zn, 0.0)
    l2 = jnp.sqrt(jnp.sum(zn * zn, axis=-1, keepdims=True))
    return zn / jnp.maximum(l2, 1e-12)


def xavier_uniform(key, fan_in, fan_out):
    bound = (6.0 / (fan_in + fan_out)) ** 0.5
    return jax.random.uniform(key, (fan_in, fan_out), jnp.float32, -bound, bound)


def init_params(key, d_in, feature_dim, hidden_dim, output_dim):
    k0, k1, k2 = jax.random.split(key, 3)
    wb = xavier_uniform(k0, d_in, feature_dim)          # stand-in backbone weight
    bb = jnp.zeros((1, feature_dim), jnp.float32)
    w1 = xavier_uniform(k1, feature_dim, hidden_dim)    # ProjectionHead.fc1
    b1 = jnp.zeros((1, hidden_dim), jnp.float32)
    w2 = xavier_uniform(k2, hidden_dim, output_dim)     # ProjectionHead.fc2
    b2 = jnp.zeros((1, output_dim), jnp.float32)
    gamma = jnp.ones((1, output_dim), jnp.float32)      # LayerNorm weight
    beta = jnp.zeros((1, output_dim), jnp.float32)      # LayerNorm bias
    return (wb, bb, w1, b1, w2, b2, gamma, beta)


if __name__ == "__main__":
    # Small shapes consistent with the module: image [B, 3, H, W] -> features -> [B, 128]
    B, C, H, W = 2, 3, 16, 16
    feature_dim, hidden_dim, output_dim = 256, 512, 128
    d_in = C * H * W

    key = jax.random.PRNGKey(0)
    kx, kp = jax.random.split(key)
    x = jax.random.normal(kx, (B, C, H, W), jnp.float32)
    params = init_params(kp, d_in, feature_dim, hidden_dim, output_dim)

    # One-time weight prep (pad/cast) hoisted out of the forward path.
    prepared = jax.block_until_ready(prepare_encoder_params(params))

    z = jax.block_until_ready(encoder_forward(x, prepared))

    # sanity: shape, L2-normalized rows (zero rows allowed by F.normalize eps handling)
    norms = jnp.sqrt(jnp.sum(z * z, axis=1))
    assert z.shape == (B, output_dim)
    assert bool(jnp.all((jnp.abs(norms - 1.0) < 1e-4) | (norms < 1e-6)))

    # numerical check vs f32 reference (loose tolerance: matmuls run in bf16)
    z_ref = encoder_reference(x, params)
    assert bool(jnp.max(jnp.abs(z - z_ref)) < 5e-2)

    print("KERNEL_OK")
</pallas_src>

<mosaic_0001>
module attributes {stable_mosaic.version = 11 : i64} {
  func.func @encoder_kernel(%arg0: i32, %arg1: i32, %arg2: memref<8x768xbf16, #tpu.memory_space<vmem>>, %arg3: memref<768x256xbf16, #tpu.memory_space<vmem>>, %arg4: memref<1x256xf32, #tpu.memory_space<vmem>>, %arg5: memref<256x512xbf16, #tpu.memory_space<vmem>>, %arg6: memref<1x512xf32, #tpu.memory_space<vmem>>, %arg7: memref<512x128xbf16, #tpu.memory_space<vmem>>, %arg8: memref<1x128xf32, #tpu.memory_space<vmem>>, %arg9: memref<1x128xf32, #tpu.memory_space<vmem>>, %arg10: memref<1x128xf32, #tpu.memory_space<vmem>>, %arg11: memref<8x128xf32, #tpu.memory_space<vmem>>, %arg12: memref<8x256xf32, #tpu.memory_space<vmem>>) attributes {dimension_semantics = [#tpu.dimension_semantics<parallel>, #tpu.dimension_semantics<arbitrary>], iteration_bounds = array<i64: 1, 1>, scalar_prefetch = 0 : i64, scratch_operands = 1 : i64, tpu.core_type = #tpu.core_type<tc>, window_params = [{transform_indices = @transform_0, window_bounds = array<i64: 8, 768>}, {transform_indices = @transform_1, window_bounds = array<i64: 768, 256>}, {pipeline_mode = #tpu.pipeline_mode<synchronous>, transform_indices = @transform_2, window_bounds = array<i64: 1, 256>}, {pipeline_mode = #tpu.pipeline_mode<synchronous>, transform_indices = @transform_3, window_bounds = array<i64: 256, 512>}, {pipeline_mode = #tpu.pipeline_mode<synchronous>, transform_indices = @transform_4, window_bounds = array<i64: 1, 512>}, {pipeline_mode = #tpu.pipeline_mode<synchronous>, transform_indices = @transform_5, window_bounds = array<i64: 512, 128>}, {pipeline_mode = #tpu.pipeline_mode<synchronous>, transform_indices = @transform_6, window_bounds = array<i64: 1, 128>}, {pipeline_mode = #tpu.pipeline_mode<synchronous>, transform_indices = @transform_7, window_bounds = array<i64: 1, 128>}, {pipeline_mode = #tpu.pipeline_mode<synchronous>, transform_indices = @transform_8, window_bounds = array<i64: 1, 128>}, {transform_indices = @transform_9, window_bounds = array<i64: 8, 128>}]} {
    %c0_i32 = arith.constant 0 : i32
    %0 = arith.cmpi eq, %arg1, %c0_i32 : i32
    %1 = arith.extui %0 : i1 to i32
    %c0_i32_0 = arith.constant 0 : i32
    %2 = arith.cmpi ne, %1, %c0_i32_0 : i32
    scf.if %2 {
      %cst_10 = arith.constant 0.000000e+00 : f32
      %12 = vector.broadcast %cst_10 : f32 to vector<8x256xf32>
      %c0_11 = arith.constant 0 : index
      %c0_12 = arith.constant 0 : index
      %13 = vector.load %arg12[%c0_11, %c0_12] : memref<8x256xf32, #tpu.memory_space<vmem>>, vector<8x256xf32>
      tpu.vector_store %arg12[%c0_11, %c0_12], %12 {strides = array<i32>} : memref<8x256xf32, #tpu.memory_space<vmem>>, vector<8x256xf32>,
    } else {
    }
    %c0 = arith.constant 0 : index
    %c0_1 = arith.constant 0 : index
    %3 = vector.load %arg12[%c0, %c0_1] : memref<8x256xf32, #tpu.memory_space<vmem>>, vector<8x256xf32>
    %c0_2 = arith.constant 0 : index
    %c0_3 = arith.constant 0 : index
    %4 = vector.load %arg2[%c0_2, %c0_3] : memref<8x768xbf16, #tpu.memory_space<vmem>>, vector<8x768xbf16>
    %c0_4 = arith.constant 0 : index
    %c0_5 = arith.constant 0 : index
    %5 = vector.load %arg3[%c0_4, %c0_5] : memref<768x256xbf16, #tpu.memory_space<vmem>>, vector<768x256xbf16>
    %cst = arith.constant dense<0.000000e+00> : vector<8x256xf32>
    %6 = tpu.matmul %4, %5, %cst {dimension_numbers = #tpu.dot_dimension_numbers<[1], [0], [0], [1], [0, 0, 1, 1], [], []>} : vector<8x768xbf16>, vector<768x256xbf16>, vector<8x256xf32> -> vector<8x256xf32>
    %7 = arith.addf %3, %6 : vector<8x256xf32>
    %c0_6 = arith.constant 0 : index
    %c0_7 = arith.constant 0 : index
    %8 = vector.load %arg12[%c0_6, %c0_7] : memref<8x256xf32, #tpu.memory_space<vmem>>, vector<8x256xf32>
    tpu.vector_store %arg12[%c0_6, %c0_7], %7 {strides = array<i32>} : memref<8x256xf32, #tpu.memory_space<vmem>>, vector<8x256xf32>,
    %c0_i32_8 = arith.constant 0 : i32
    %9 = arith.cmpi eq, %arg1, %c0_i32_8 : i32
    %10 = arith.extui %9 : i1 to i32
    %c0_i32_9 = arith.constant 0 : i32
    %11 = arith.cmpi ne, %10, %c0_i32_9 : i32
    scf.if %11 {
      %c0_10 = arith.constant 0 : index
      %c0_11 = arith.constant 0 : index
      %12 = vector.load %arg12[%c0_10, %c0_11] : memref<8x256xf32, #tpu.memory_space<vmem>>, vector<8x256xf32>
      %c0_12 = arith.constant 0 : index
      %c0_13 = arith.constant 0 : index
      %13 = vector.load %arg4[%c0_12, %c0_13] : memref<1x256xf32, #tpu.memory_space<vmem>>, vector<1x256xf32>
      %14 = vector.broadcast %13 : vector<1x256xf32> to vector<8x256xf32>
      %15 = arith.addf %12, %14 : vector<8x256xf32>
      %16 = arith.truncf %15 : vector<8x256xf32> to vector<8x256xbf16>
      %c0_14 = arith.constant 0 : index
      %c0_15 = arith.constant 0 : index
      %17 = vector.load %arg5[%c0_14, %c0_15] : memref<256x512xbf16, #tpu.memory_space<vmem>>, vector<256x512xbf16>
      %cst_16 = arith.constant dense<0.000000e+00> : vector<8x512xf32>
      %18 = tpu.matmul %16, %17, %cst_16 {dimension_numbers = #tpu.dot_dimension_numbers<[1], [0], [0], [1], [0, 0, 1, 1], [], []>} : vector<8x256xbf16>, vector<256x512xbf16>, vector<8x512xf32> -> vector<8x512xf32>
      %c0_17 = arith.constant 0 : index
      %c0_18 = arith.constant 0 : index
      %19 = vector.load %arg6[%c0_17, %c0_18] : memref<1x512xf32, #tpu.memory_space<vmem>>, vector<1x512xf32>
      %20 = vector.broadcast %19 : vector<1x512xf32> to vector<8x512xf32>
      %21 = arith.addf %18, %20 : vector<8x512xf32>
      %cst_19 = arith.constant 0.000000e+00 : f32
      %22 = vector.broadcast %cst_19 : f32 to vector<8x512xf32>
      %23 = arith.maximumf %21, %22 : vector<8x512xf32>
      %24 = arith.truncf %23 : vector<8x512xf32> to vector<8x512xbf16>
      %c0_20 = arith.constant 0 : index
      %c0_21 = arith.constant 0 : index
      %25 = vector.load %arg7[%c0_20, %c0_21] : memref<512x128xbf16, #tpu.memory_space<vmem>>, vector<512x128xbf16>
      %cst_22 = arith.constant dense<0.000000e+00> : vector<8x128xf32>
      %26 = tpu.matmul %24, %25, %cst_22 {dimension_numbers = #tpu.dot_dimension_numbers<[1], [0], [0], [1], [0, 0, 1, 1], [], []>} : vector<8x512xbf16>, vector<512x128xbf16>, vector<8x128xf32> -> vector<8x128xf32>
      %c0_23 = arith.constant 0 : index
      %c0_24 = arith.constant 0 : index
      %27 = vector.load %arg8[%c0_23, %c0_24] : memref<1x128xf32, #tpu.memory_space<vmem>>, vector<1x128xf32>
      %28 = vector.broadcast %27 : vector<1x128xf32> to vector<8x128xf32>
      %29 = arith.addf %26, %28 : vector<8x128xf32>
      %cst_25 = arith.constant dense<0.000000e+00> : vector<8xf32>
      %30 = vector.multi_reduction <add>, %29, %cst_25 [1] : vector<8x128xf32> to vector<8xf32>
      %31 = vector.shape_cast %30 : vector<8xf32> to vector<8x1xf32>
      %cst_26 = arith.constant 1.280000e+02 : f32
      %32 = vector.broadcast %cst_26 : f32 to vector<8x1xf32>
      %33 = arith.divf %31, %32 : vector<8x1xf32>
      %34 = vector.broadcast %33 : vector<8x1xf32> to vector<8x128xf32>
      %35 = arith.subf %29, %34 : vector<8x128xf32>
      %36 = arith.mulf %35, %35 : vector<8x128xf32>
      %cst_27 = arith.constant dense<0.000000e+00> : vector<8xf32>
      %37 = vector.multi_reduction <add>, %36, %cst_27 [1] : vector<8x128xf32> to vector<8xf32>
      %38 = vector.shape_cast %37 : vector<8xf32> to vector<8x1xf32>
      %cst_28 = arith.constant 1.280000e+02 : f32
      %39 = vector.broadcast %cst_28 : f32 to vector<8x1xf32>
      %40 = arith.divf %38, %39 : vector<8x1xf32>
      %cst_29 = arith.constant 9.99999974E-6 : f32
      %41 = vector.broadcast %cst_29 : f32 to vector<8x1xf32>
      %42 = arith.addf %40, %41 : vector<8x1xf32>
      %43 = math.rsqrt %42 : vector<8x1xf32>
      %44 = vector.broadcast %43 : vector<8x1xf32> to vector<8x128xf32>
      %45 = arith.mulf %35, %44 : vector<8x128xf32>
      %c0_30 = arith.constant 0 : index
      %c0_31 = arith.constant 0 : index
      %46 = vector.load %arg9[%c0_30, %c0_31] : memref<1x128xf32, #tpu.memory_space<vmem>>, vector<1x128xf32>
      %47 = vector.broadcast %46 : vector<1x128xf32> to vector<8x128xf32>
      %48 = arith.mulf %45, %47 : vector<8x128xf32>
      %c0_32 = arith.constant 0 : index
      %c0_33 = arith.constant 0 : index
      %49 = vector.load %arg10[%c0_32, %c0_33] : memref<1x128xf32, #tpu.memory_space<vmem>>, vector<1x128xf32>
      %50 = vector.broadcast %49 : vector<1x128xf32> to vector<8x128xf32>
      %51 = arith.addf %48, %50 : vector<8x128xf32>
      %cst_34 = arith.constant 0.000000e+00 : f32
      %52 = vector.broadcast %cst_34 : f32 to vector<8x128xf32>
      %53 = arith.maximumf %51, %52 : vector<8x128xf32>
      %54 = arith.mulf %53, %53 : vector<8x128xf32>
      %cst_35 = arith.constant dense<0.000000e+00> : vector<8xf32>
      %55 = vector.multi_reduction <add>, %54, %cst_35 [1] : vector<8x128xf32> to vector<8xf32>
      %56 = vector.shape_cast %55 : vector<8xf32> to vector<8x1xf32>
      %cst_36 = arith.constant 1.000000e-24 : f32
      %57 = vector.broadcast %cst_36 : f32 to vector<8x1xf32>
      %58 = arith.maximumf %56, %57 : vector<8x1xf32>
      %59 = math.rsqrt %58 : vector<8x1xf32>
      %60 = vector.broadcast %59 : vector<8x1xf32> to vector<8x128xf32>
      %61 = arith.mulf %53, %60 : vector<8x128xf32>
      %c0_37 = arith.constant 0 : index
      %c0_38 = arith.constant 0 : index
      %62 = vector.load %arg11[%c0_37, %c0_38] : memref<8x128xf32, #tpu.memory_space<vmem>>, vector<8x128xf32>
      tpu.vector_store %arg11[%c0_37, %c0_38], %61 {strides = array<i32>} : memref<8x128xf32, #tpu.memory_space<vmem>>, vector<8x128xf32>,
    } else {
    }
    return
  }
  func.func @transform_0(%arg0: i32, %arg1: i32) -> (i32, i32) {
    %c0_i32 = arith.constant 0 : i32
    return %arg0, %arg1 : i32, i32
  }
  func.func @transform_1(%arg0: i32, %arg1: i32) -> (i32, i32) {
    %c0_i32 = arith.constant 0 : i32
    %c0_i32_0 = arith.constant 0 : i32
    return %arg1, %c0_i32 : i32, i32
  }
  func.func @transform_2(%arg0: i32, %arg1: i32) -> (i32, i32) {
    %c0_i32 = arith.constant 0 : i32
    %c0_i32_0 = arith.constant 0 : i32
    %c0_i32_1 = arith.constant 0 : i32
    return %c0_i32, %c0_i32_0 : i32, i32
  }
  func.func @transform_3(%arg0: i32, %arg1: i32) -> (i32, i32) {
    %c0_i32 = arith.constant 0 : i32
    %c0_i32_0 = arith.constant 0 : i32
    %c0_i32_1 = arith.constant 0 : i32
    return %c0_i32, %c0_i32_0 : i32, i32
  }
  func.func @transform_4(%arg0: i32, %arg1: i32) -> (i32, i32) {
    %c0_i32 = arith.constant 0 : i32
    %c0_i32_0 = arith.constant 0 : i32
    %c0_i32_1 = arith.constant 0 : i32
    return %c0_i32, %c0_i32_0 : i32, i32
  }
  func.func @transform_5(%arg0: i32, %arg1: i32) -> (i32, i32) {
    %c0_i32 = arith.constant 0 : i32
    %c0_i32_0 = arith.constant 0 : i32
    %c0_i32_1 = arith.constant 0 : i32
    return %c0_i32, %c0_i32_0 : i32, i32
  }
  func.func @transform_6(%arg0: i32, %arg1: i32) -> (i32, i32) {
    %c0_i32 = arith.constant 0 : i32
    %c0_i32_0 = arith.constant 0 : i32
    %c0_i32_1 = arith.constant 0 : i32
    return %c0_i32, %c0_i32_0 : i32, i32
  }
  func.func @transform_7(%arg0: i32, %arg1: i32) -> (i32, i32) {
    %c0_i32 = arith.constant 0 : i32
    %c0_i32_0 = arith.constant 0 : i32
    %c0_i32_1 = arith.constant 0 : i32
    return %c0_i32, %c0_i32_0 : i32, i32
  }
  func.func @transform_8(%arg0: i32, %arg1: i32) -> (i32, i32) {
    %c0_i32 = arith.constant 0 : i32
    %c0_i32_0 = arith.constant 0 : i32
    %c0_i32_1 = arith.constant 0 : i32
    return %c0_i32, %c0_i32_0 : i32, i32
  }
  func.func @transform_9(%arg0: i32, %arg1: i32) -> (i32, i32) {
    %c0_i32 = arith.constant 0 : i32
    %c0_i32_0 = arith.constant 0 : i32
    return %arg0, %c0_i32 : i32, i32
  }
}

</mosaic_0001>

<bundles_post_ra>
// kernel: encoder_forward.1
= control target key start
LH: loop header
LB: loop body
LE: loop exit
PB: predicated region body
PF: predicated region fallthrough
CT: control target
= control target key end

     0   :  { %14 = vsyncpa [#allocation4], 0  ;;  %s2451_s0 = inlined_call_operand.vmem [shape: bf16[8,768], index: 0, kind: input, shape index: {}]   ;;  %s2452_s1 = inlined_call_operand.hbm [shape: bf16[768,256], index: 1, kind: input, shape index: {}]   ;;  %s2453_s2 = inlined_call_operand.vmem [shape: f32[1,256], index: 2, kind: input, shape index: {}]   ;;  %s2454_s3 = inlined_call_operand.hbm [shape: bf16[256,512], index: 3, kind: input, shape index: {}]   ;;  %s2455_s4 = inlined_call_operand.vmem [shape: f32[1,512], index: 4, kind: input, shape index: {}]   ;;  %s2456_s5 = inlined_call_operand.hbm [shape: bf16[512,128], index: 5, kind: input, shape index: {}]   ;;  %s2457_s6 = inlined_call_operand.vmem [shape: f32[1,128], index: 6, kind: input, shape index: {}]   ;;  %s2458_s7 = inlined_call_operand.vmem [shape: f32[1,128], index: 7, kind: input, shape index: {}]   ;;  %s2459_s8 = inlined_call_operand.vmem [shape: f32[1,128], index: 8, kind: input, shape index: {}]   ;;  %s2460_s9 = inlined_call_operand.vmem [shape: f32[8,128], index: 9, kind: output, shape index: {}]  }
   0x1   :  { %15 = vsyncpa [#allocation6], 0  ;;  %s2317_s30 = smov [#allocation5]   ;;  %s2247_s13 = scalar_lea.hbm %s2454_s3, 8192 }
   0x2   :  { %s37_s10 = sshll.u32 %s2317_s30, 4  ;;  %p2248_p0 = scmp.ne.s32.totalorder %s2454_s3, %s2247_s13  ;;  %s38_s10 = int_to_ptr.vmem [resolvable:$true] %s37_s10 }
   0x3   :  { %p2251_p1 = scmp.lt.u32.totalorder %s2247_s13, %s2454_s3 }
   0x5   :  { %p2253_p2 = pnand %p2251_p1, %p2248_p0 }
   0x7   :  { %2256 = shalt.err (!%p2253_p2)
}
   0x8   :  { %s2257_s18 = scalar_lea.vmem %s38_s10, 8192  ;;  %p2262_p4 = scmp.lt.s32.totalorder %s38_s10, %s38_s10 }
   0x9   :  { %p2258_p3 = scmp.ne.s32.totalorder %s38_s10, %s2257_s18  ;;  %p2263_p5 = scmp.lt.s32.totalorder %s2257_s18, %s2257_s18 }
   0xb   :  { %p2264_p6 = por %p2263_p5, %p2262_p4 }
   0xd   :  { %p2265_p7 = pnand %p2264_p6, %p2258_p3 }
   0xf   :  { %2268 = shalt.err (!%p2265_p7)
}
  0x10   :  { %s2318_s19 = smov 256   ;;  %s2319_s20 = smov 16  }
  0x11   :  { %43 = dma.hbm_to_vmem [thread:$0]  %s2454_s3, 8192, %s38_s10, [#allocation6], %s2318_s19, %s2318_s19, %s2319_s20  }
  0x12   :  { %s2320_s23 = smov [#allocation3]   ;;  %s2269_s27 = scalar_lea.hbm %s2452_s1, 12288 }
  0x13   :  { %s23_s24 = sshll.u32 %s2320_s23, 4  ;;  %p2270_p8 = scmp.ne.s32.totalorder %s2452_s1, %s2269_s27  ;;  %s24_s24 = int_to_ptr.vmem [resolvable:$true] %s23_s24 }
  0x14   :  { %p2273_p9 = scmp.lt.u32.totalorder %s2269_s27, %s2452_s1 }
  0x16   :  { %p2275_p10 = pnand %p2273_p9, %p2270_p8 }
  0x18   :  { %2278 = shalt.err (!%p2275_p10)
}
  0x19   :  { %s2279_s12 = scalar_lea.vmem %s24_s24, 12288  ;;  %p2284_p12 = scmp.lt.s32.totalorder %s24_s24, %s24_s24 }
  0x1a   :  { %p2280_p11 = scmp.ne.s32.totalorder %s24_s24, %s2279_s12  ;;  %p2285_p13 = scmp.lt.s32.totalorder %s2279_s12, %s2279_s12 }
  0x1c   :  { %p2286_p0 = por %p2285_p13, %p2284_p12 }
  0x1e   :  { %p2287_p1 = pnand %p2286_p0, %p2280_p11 }
  0x20   :  { %2290 = shalt.err (!%p2287_p1)
}
  0x21   :  { %s2321_s3 = smov 128   ;;  %s2322_s10 = smov 8  }
  0x22   :  { %29 = dma.hbm_to_vmem [thread:$0]  %s2452_s1, 12288, %s24_s24, [#allocation4], %s2321_s3, %s2321_s3, %s2322_s10  }
  0x23   :  { %s2323_s15 = smov [#allocation7]   ;;  %s2291_s19 = scalar_lea.hbm %s2456_s5, 4096 }
  0x24   :  { %s51_s16 = sshll.u32 %s2323_s15, 4  ;;  %p2292_p2 = scmp.ne.s32.totalorder %s2456_s5, %s2291_s19  ;;  %s52_s16 = int_to_ptr.vmem [resolvable:$true] %s51_s16 }
  0x25   :  { %p2295_p3 = scmp.lt.u32.totalorder %s2291_s19, %s2456_s5 }
  0x27   :  { %p2297_p4 = pnand %p2295_p3, %p2292_p2 }
  0x29   :  { %2300 = shalt.err (!%p2297_p4)
}
  0x2a   :  { %s2301_s25 = scalar_lea.vmem %s52_s16, 4096  ;;  %p2306_p6 = scmp.lt.s32.totalorder %s52_s16, %s52_s16 }
  0x2b   :  { %p2302_p5 = scmp.ne.s32.totalorder %s52_s16, %s2301_s25  ;;  %p2307_p7 = scmp.lt.s32.totalorder %s2301_s25, %s2301_s25 }
  0x2d   :  { %p2308_p8 = por %p2307_p7, %p2306_p6 }
  0x2f   :  { %p2309_p9 = pnand %p2308_p8, %p2302_p5 }
  0x31   :  { %2312 = shalt.err (!%p2309_p9)
}
  0x32   :  { %s2324_s1 = smov 64   ;;  %s2325_s24 = smov 4  }
  0x33   :  { %57 = dma.hbm_to_vmem [thread:$0]  %s2456_s5, 4096, %s52_s16, [#allocation6], %s2324_s1, %s2324_s1, %s2325_s24  }
  0x34   :  { %2313 = dma.done.wait [#allocation4], 12288  }
  0x35   :  { %2314 = vsyncadd [#allocation4], 4294955008 }
  0x36   :  { %2315 = dma.done.wait [#allocation6], 12288  }
  0x37   :  { %2316 = vsyncadd [#allocation6], 4294955008  ;;  %v1965_v0 = vld [vmem:[#allocation3 + $0x4] ss:$8 sps:$4 sm:$0xff]   ;;  %v1969_v2 = vld [vmem:[#allocation3] ss:$8 sps:$4 sm:$0xff]  }
  0x38   :  { %v1967_v1 = vld [vmem:[#allocation3 + $0x104] ss:$8 sps:$4 sm:$0xff]   ;;  %682 = vmatprep.subr.bf16.mxu0 %v1965_v0  ;;  %v1970_v3 = vld [vmem:[#allocation3 + $0x100] ss:$8 sps:$4 sm:$0xff]   ;;  %v1971_v4 = vld [vmem:[#allocation3 + $0x14] ss:$8 sps:$4 sm:$0xff]  }
  0x39   :  { %723 = vmatprep.subr.bf16.mxu1 %v1967_v1  ;;  %683 = vmatpush1.bf16.msra.mxu0 %v1969_v2  ;;  %v1973_v5 = vld [vmem:[#allocation3 + $0x114] ss:$8 sps:$4 sm:$0xff]   ;;  %v1975_v6 = vld [vmem:[#allocation3 + $0x10] ss:$8 sps:$4 sm:$0xff]   ;;  %v1977_v8 = vld [vmem:[#allocation3 + $0x24] ss:$8 sps:$4 sm:$0xff]  }
  0x3a   :  { %724 = vmatpush1.bf16.msra.mxu1 %v1970_v3  ;;  %684 = vmatprep.subr.bf16.mxu0 %v1971_v4  ;;  %v1976_v7 = vld [vmem:[#allocation3 + $0x110] ss:$8 sps:$4 sm:$0xff]   ;;  %v1979_v9 = vld [vmem:[#allocation3 + $0x124] ss:$8 sps:$4 sm:$0xff]   ;;  %v1981_v10 = vld [vmem:[#allocation3 + $0x20] ss:$8 sps:$4 sm:$0xff]  }
  0x3b   :  { %725 = vmatprep.subr.bf16.mxu1 %v1973_v5  ;;  %v1982_v11 = vld [vmem:[#allocation3 + $0x120] ss:$8 sps:$4 sm:$0xff]   ;;  %v1983_v12 = vld [vmem:[#allocation3 + $0x34] ss:$8 sps:$4 sm:$0xff]   ;;  %v1987_v14 = vld [vmem:[#allocation3 + $0x30] ss:$8 sps:$4 sm:$0xff]  }
  0x3c   :  { %v1985_v13 = vld [vmem:[#allocation3 + $0x134] ss:$8 sps:$4 sm:$0xff]   ;;  %v1988_v15 = vld [vmem:[#allocation3 + $0x130] ss:$8 sps:$4 sm:$0xff]   ;;  %v1989_v16 = vld [vmem:[#allocation3 + $0x44] ss:$8 sps:$4 sm:$0xff]  }
  0x3d   :  { %685 = vmatpush1.bf16.msra.mxu0 %v1975_v6  ;;  %v1991_v17 = vld [vmem:[#allocation3 + $0x144] ss:$8 sps:$4 sm:$0xff]   ;;  %v1993_v18 = vld [vmem:[#allocation3 + $0x40] ss:$8 sps:$4 sm:$0xff]   ;;  %v1995_v20 = vld [vmem:[#allocation3 + $0x54] ss:$8 sps:$4 sm:$0xff]  }
  0x3e   :  { %726 = vmatpush1.bf16.msra.mxu1 %v1976_v7  ;;  %686 = vmatprep.subr.bf16.mxu0 %v1977_v8  ;;  %v1994_v19 = vld [vmem:[#allocation3 + $0x140] ss:$8 sps:$4 sm:$0xff]   ;;  %v1997_v21 = vld [vmem:[#allocation3 + $0x154] ss:$8 sps:$4 sm:$0xff]   ;;  %v1999_v22 = vld [vmem:[#allocation3 + $0x50] ss:$8 sps:$4 sm:$0xff]  }
  0x3f   :  { %727 = vmatprep.subr.bf16.mxu1 %v1979_v9  ;;  %v2000_v23 = vld [vmem:[#allocation3 + $0x150] ss:$8 sps:$4 sm:$0xff]   ;;  %v2001_v24 = vld [vmem:[#allocation3 + $0x64] ss:$8 sps:$4 sm:$0xff]   ;;  %v2005_v26 = vld [vmem:[#allocation3 + $0x60] ss:$8 sps:$4 sm:$0xff]  }
  0x40   :  { %v2003_v25 = vld [vmem:[#allocation3 + $0x164] ss:$8 sps:$4 sm:$0xff]   ;;  %v2006_v27 = vld [vmem:[#allocation3 + $0x160] ss:$8 sps:$4 sm:$0xff]   ;;  %v2007_v28 = vld [vmem:[#allocation3 + $0x74] ss:$8 sps:$4 sm:$0xff]  }
  0x41   :  { %687 = vmatpush1.bf16.msra.mxu0 %v1981_v10  ;;  %v2009_v29 = vld [vmem:[#allocation3 + $0x174] ss:$8 sps:$4 sm:$0xff]   ;;  %v2011_v30 = vld [vmem:[#allocation3 + $0x70] ss:$8 sps:$4 sm:$0xff]   ;;  %v2013_v32 = vld [vmem:[#allocation3 + $0x84] ss:$8 sps:$4 sm:$0xff]  }
  0x42   :  { %728 = vmatpush1.bf16.msra.mxu1 %v1982_v11  ;;  %688 = vmatprep.subr.bf16.mxu0 %v1983_v12  ;;  %v2012_v31 = vld [vmem:[#allocation3 + $0x170] ss:$8 sps:$4 sm:$0xff]   ;;  %v2015_v33 = vld [vmem:[#allocation3 + $0x184] ss:$8 sps:$4 sm:$0xff]   ;;  %v2017_v34 = vld [vmem:[#allocation3 + $0x80] ss:$8 sps:$4 sm:$0xff]  }
  0x43   :  { %729 = vmatprep.subr.bf16.mxu1 %v1985_v13  ;;  %v2018_v35 = vld [vmem:[#allocation3 + $0x180] ss:$8 sps:$4 sm:$0xff]   ;;  %v2019_v36 = vld [vmem:[#allocation3 + $0x94] ss:$8 sps:$4 sm:$0xff]   ;;  %v2023_v38 = vld [vmem:[#allocation3 + $0x90] ss:$8 sps:$4 sm:$0xff]  }
  0x44   :  { %v2021_v37 = vld [vmem:[#allocation3 + $0x194] ss:$8 sps:$4 sm:$0xff]   ;;  %v2024_v39 = vld [vmem:[#allocation3 + $0x190] ss:$8 sps:$4 sm:$0xff]   ;;  %v2025_v40 = vld [vmem:[#allocation3 + $0xa4] ss:$8 sps:$4 sm:$0xff]  }
  0x45   :  { %689 = vmatpush1.bf16.msra.mxu0 %v1987_v14  ;;  %v2027_v41 = vld [vmem:[#allocation3 + $0x1a4] ss:$8 sps:$4 sm:$0xff]   ;;  %v2029_v42 = vld [vmem:[#allocation3 + $0xa0] ss:$8 sps:$4 sm:$0xff]   ;;  %v2031_v44 = vld [vmem:[#allocation3 + $0xb4] ss:$8 sps:$4 sm:$0xff]  }
  0x46   :  { %730 = vmatpush1.bf16.msra.mxu1 %v1988_v15  ;;  %690 = vmatprep.subr.bf16.mxu0 %v1989_v16  ;;  %v2030_v43 = vld [vmem:[#allocation3 + $0x1a0] ss:$8 sps:$4 sm:$0xff]   ;;  %v2033_v45 = vld [vmem:[#allocation3 + $0x1b4] ss:$8 sps:$4 sm:$0xff]   ;;  %v2035_v49 = vld [vmem:[#allocation3 + $0xb0] ss:$8 sps:$4 sm:$0xff]  }
  0x47   :  { %731 = vmatprep.subr.bf16.mxu1 %v1991_v17  ;;  %v82_v46 = vld [vmem:[%s2451_s0] sm:$0xff]  ;;  %v83_v48 = vld [vmem:[%s2451_s0 + $0x8] sm:$0xff]  ;;  %v2036_v50 = vld [vmem:[#allocation3 + $0x1b0] ss:$8 sps:$4 sm:$0xff]  }
  0x48   :  { %v1712_v47 = vcombine.high %v82_v46, %v82_v46  ;;  %v1714_v51 = vcombine.high %v83_v48, %v83_v48  ;;  %v2037_v52 = vld [vmem:[#allocation3 + $0xc4] ss:$8 sps:$4 sm:$0xff]   ;;  %v2041_v54 = vld [vmem:[#allocation3 + $0xc0] ss:$8 sps:$4 sm:$0xff]   ;;  %v2043_v56 = vld [vmem:[#allocation3 + $0xd4] ss:$8 sps:$4 sm:$0xff]   ;;  %v1711_v5 = vcombine.low %v82_v46, %v82_v46  ;;  %v1713_v6 = vcombine.low %v83_v48, %v83_v48 }
  0x49   :  { %691 = vmatpush1.bf16.msra.mxu0 %v1993_v18  ;;  %v2039_v53 = vld [vmem:[#allocation3 + $0x1c4] ss:$8 sps:$4 sm:$0xff]   ;;  %v2042_v55 = vld [vmem:[#allocation3 + $0x1c0] ss:$8 sps:$4 sm:$0xff]   ;;  %v2045_v57 = vld [vmem:[#allocation3 + $0x1d4] ss:$8 sps:$4 sm:$0xff]  }
  0x4a   :  { %732 = vmatpush1.bf16.msra.mxu1 %v1994_v19  ;;  %692 = vmatprep.subr.bf16.mxu0 %v1995_v20  ;;  %v2047_v58 = vld [vmem:[#allocation3 + $0xd0] ss:$8 sps:$4 sm:$0xff]   ;;  %v2049_v60 = vld [vmem:[#allocation3 + $0xe4] ss:$8 sps:$4 sm:$0xff]   ;;  %v2053_v62 = vld [vmem:[#allocation3 + $0xe0] ss:$8 sps:$4 sm:$0xff]  }
  0x4b   :  { %733 = vmatprep.subr.bf16.mxu1 %v1997_v21  ;;  %714 = vmatprep.mubr.bf16.mxu0 %v1712_v47  ;;  %v2048_v59 = vld [vmem:[#allocation3 + $0x1d0] ss:$8 sps:$4 sm:$0xff]   ;;  %v2051_v61 = vld [vmem:[#allocation3 + $0x1e4] ss:$8 sps:$4 sm:$0xff]   ;;  %v2054_v63 = vld [vmem:[#allocation3 + $0x1e0] ss:$8 sps:$4 sm:$0xff]  }
  0x4c   :  { %755 = vmatprep.mubr.bf16.mxu1 %v1714_v51  ;;  %v2055_v0 = vld [vmem:[#allocation3 + $0xf4] ss:$8 sps:$4 sm:$0xff]   ;;  %v2059_v2 = vld [vmem:[#allocation3 + $0xf0] ss:$8 sps:$4 sm:$0xff]   ;;  %v2067_v4 = vld [vmem:[#allocation3 + $0x204] ss:$8 sps:$4 sm:$0xff]  }
  0x4d   :  { %693 = vmatpush1.bf16.msra.mxu0 %v1999_v22  ;;  %v2057_v1 = vld [vmem:[#allocation3 + $0x1f4] ss:$8 sps:$4 sm:$0xff]   ;;  %v2060_v3 = vld [vmem:[#allocation3 + $0x1f0] ss:$8 sps:$4 sm:$0xff]   ;;  %v2065_v7 = vld [vmem:[#allocation3 + $0x200] ss:$8 sps:$4 sm:$0xff]  }
  0x4e   :  { %734 = vmatpush1.bf16.msra.mxu1 %v2000_v23  ;;  %694 = vmatprep.subr.bf16.mxu0 %v2001_v24  ;;  %v2070_v8 = vld [vmem:[#allocation3 + $0x214] ss:$8 sps:$4 sm:$0xff]   ;;  %v2068_v11 = vld [vmem:[#allocation3 + $0x210] ss:$8 sps:$4 sm:$0xff]   ;;  %v2073_v12 = vld [vmem:[#allocation3 + $0x224] ss:$8 sps:$4 sm:$0xff]  }
  0x4f   :  { %735 = vmatprep.subr.bf16.mxu1 %v2003_v25  ;;  %v2421_v9 = vld [vmem:[%s2451_s0 + $0x10] sm:$0xff]  ;;  %v2071_v13 = vld [vmem:[#allocation3 + $0x220] ss:$8 sps:$4 sm:$0xff]   ;;  %v2079_v16 = vld [vmem:[#allocation3 + $0x244] ss:$8 sps:$4 sm:$0xff]  }
  0x50   :  { %v1716_v10 = vcombine.high %v2421_v9, %v2421_v9  ;;  %v2076_v14 = vld [vmem:[#allocation3 + $0x234] ss:$8 sps:$4 sm:$0xff]   ;;  %v2074_v15 = vld [vmem:[#allocation3 + $0x230] ss:$8 sps:$4 sm:$0xff]   ;;  %v2077_v17 = vld [vmem:[#allocation3 + $0x240] ss:$8 sps:$4 sm:$0xff]  }
  0x51   :  { %695 = vmatpush1.bf16.msra.mxu0 %v2005_v26  ;;  %v2082_v18 = vld [vmem:[#allocation3 + $0x254] ss:$8 sps:$4 sm:$0xff]   ;;  %v2080_v19 = vld [vmem:[#allocation3 + $0x250] ss:$8 sps:$4 sm:$0xff]   ;;  %v2085_v20 = vld [vmem:[#allocation3 + $0x264] ss:$8 sps:$4 sm:$0xff]  }
  0x52   :  { %736 = vmatpush1.bf16.msra.mxu1 %v2006_v27  ;;  %696 = vmatprep.subr.bf16.mxu0 %v2007_v28  ;;  %v2083_v21 = vld [vmem:[#allocation3 + $0x260] ss:$8 sps:$4 sm:$0xff]   ;;  %v2088_v22 = vld [vmem:[#allocation3 + $0x274] ss:$8 sps:$4 sm:$0xff]   ;;  %v2086_v23 = vld [vmem:[#allocation3 + $0x270] ss:$8 sps:$4 sm:$0xff]  }
  0x53   :  { %737 = vmatprep.subr.bf16.mxu1 %v2009_v29  ;;  %v2091_v24 = vld [vmem:[#allocation3 + $0x284] ss:$8 sps:$4 sm:$0xff]   ;;  %v2089_v25 = vld [vmem:[#allocation3 + $0x280] ss:$8 sps:$4 sm:$0xff]   ;;  %v2094_v26 = vld [vmem:[#allocation3 + $0x294] ss:$8 sps:$4 sm:$0xff]  }
  0x54   :  { %v2092_v27 = vld [vmem:[#allocation3 + $0x290] ss:$8 sps:$4 sm:$0xff]   ;;  %v2097_v28 = vld [vmem:[#allocation3 + $0x2a4] ss:$8 sps:$4 sm:$0xff]   ;;  %v2095_v29 = vld [vmem:[#allocation3 + $0x2a0] ss:$8 sps:$4 sm:$0xff]  }
  0x55   :  { %697 = vmatpush1.bf16.msra.mxu0 %v2011_v30  ;;  %v2100_v30 = vld [vmem:[#allocation3 + $0x2b4] ss:$8 sps:$4 sm:$0xff]   ;;  %v2121_v47 = vld [vmem:[#allocation5 + $0x20] ss:$16 sps:$4 sm:$0xff]   ;;  %v2124_v48 = vld [vmem:[#allocation5 + $0x28] ss:$16 sps:$4 sm:$0xff]  }
  0x56   :  { %738 = vmatpush1.bf16.msra.mxu1 %v2012_v31  ;;  %698 = vmatprep.subr.bf16.mxu0 %v2013_v32  ;;  %v2098_v31 = vld [vmem:[#allocation3 + $0x2b0] ss:$8 sps:$4 sm:$0xff]   ;;  %v2103_v32 = vld [vmem:[#allocation3 + $0x2c4] ss:$8 sps:$4 sm:$0xff]  }
  0x57   :  { %739 = vmatprep.subr.bf16.mxu1 %v2015_v33  ;;  %v2101_v33 = vld [vmem:[#allocation3 + $0x2c0] ss:$8 sps:$4 sm:$0xff]   ;;  %v2126_v46 = vld [vmem:[#allocation5 + $0x2c] ss:$16 sps:$4 sm:$0xff]  }
  0x58   :  { %v2127_v51 = vld [vmem:[#allocation5 + $0x40] ss:$16 sps:$4 sm:$0xff]  }
  0x59   :  { %699 = vmatpush1.bf16.msra.mxu0 %v2017_v34  ;;  %v2106_v34 = vld [vmem:[#allocation3 + $0x2d4] ss:$8 sps:$4 sm:$0xff]  }
  0x5a   :  { %740 = vmatpush1.bf16.msra.mxu1 %v2018_v35  ;;  %700 = vmatprep.subr.bf16.mxu0 %v2019_v36  ;;  %v2104_v35 = vld [vmem:[#allocation3 + $0x2d0] ss:$8 sps:$4 sm:$0xff]   ;;  %v2109_v36 = vld [vmem:[#allocation3 + $0x2e4] ss:$8 sps:$4 sm:$0xff]  }
  0x5b   :  { %741 = vmatprep.subr.bf16.mxu1 %v2021_v37  ;;  %v2107_v37 = vld [vmem:[#allocation3 + $0x2e0] ss:$8 sps:$4 sm:$0xff]  }
  0x5d   :  { %701 = vmatpush1.bf16.msra.mxu0 %v2023_v38  ;;  %v2112_v38 = vld [vmem:[#allocation3 + $0x2f4] ss:$8 sps:$4 sm:$0xff]  }
  0x5e   :  { %742 = vmatpush1.bf16.msra.mxu1 %v2024_v39  ;;  %702 = vmatprep.subr.bf16.mxu0 %v2025_v40  ;;  %v2110_v39 = vld [vmem:[#allocation3 + $0x2f0] ss:$8 sps:$4 sm:$0xff]   ;;  %v1715_v40 = vcombine.low %v2421_v9, %v2421_v9  ;;  %v2165_v9 = vld [vmem:[#allocation5 + $0x104] ss:$16 sps:$4 sm:$0xff]  }
  0x5f   :  { %743 = vmatprep.subr.bf16.mxu1 %v2027_v41  ;;  %v2115_v41 = vld [vmem:[#allocation5] ss:$16 sps:$4 sm:$0xff]  }
  0x61   :  { %703 = vmatpush1.bf16.msra.mxu0 %v2029_v42  ;;  %v2117_v42 = vld [vmem:[#allocation5 + $0x4] ss:$16 sps:$4 sm:$0xff]  }
  0x62   :  { %744 = vmatpush1.bf16.msra.mxu1 %v2030_v43  ;;  %704 = vmatprep.subr.bf16.mxu0 %v2031_v44  ;;  %v2118_v43 = vld [vmem:[#allocation5 + $0x8] ss:$16 sps:$4 sm:$0xff]   ;;  %v2120_v44 = vld [vmem:[#allocation5 + $0xc] ss:$16 sps:$4 sm:$0xff]  }
  0x63   :  { %745 = vmatprep.subr.bf16.mxu1 %v2033_v45  ;;  %v2123_v45 = vld [vmem:[#allocation5 + $0x24] ss:$16 sps:$4 sm:$0xff]  }
  0x65   :  { %705 = vmatpush1.bf16.msra.mxu0 %v2035_v49  ;;  %v2129_v49 = vld [vmem:[#allocation5 + $0x44] ss:$16 sps:$4 sm:$0xff]  }
  0x66   :  { %746 = vmatpush1.bf16.msra.mxu1 %v2036_v50  ;;  %706 = vmatprep.subr.bf16.mxu0 %v2037_v52  ;;  %v2132_v50 = vld [vmem:[#allocation5 + $0x4c] ss:$16 sps:$4 sm:$0xff]   ;;  %v2130_v52 = vld [vmem:[#allocation5 + $0x48] ss:$16 sps:$4 sm:$0xff]  }
  0x67   :  { %747 = vmatprep.subr.bf16.mxu1 %v2039_v53  ;;  %v2135_v53 = vld [vmem:[#allocation5 + $0x64] ss:$16 sps:$4 sm:$0xff]  }
  0x69   :  { %707 = vmatpush1.bf16.msra.mxu0 %v2041_v54  ;;  %v2138_v54 = vld [vmem:[#allocation5 + $0x6c] ss:$16 sps:$4 sm:$0xff]  }
  0x6a   :  { %748 = vmatpush1.bf16.msra.mxu1 %v2042_v55  ;;  %708 = vmatprep.subr.bf16.mxu0 %v2043_v56  ;;  %v2133_v55 = vld [vmem:[#allocation5 + $0x60] ss:$16 sps:$4 sm:$0xff]   ;;  %v2136_v56 = vld [vmem:[#allocation5 + $0x68] ss:$16 sps:$4 sm:$0xff]  }
  0x6b   :  { %749 = vmatprep.subr.bf16.mxu1 %v2045_v57  ;;  %v2141_v57 = vld [vmem:[#allocation5 + $0x84] ss:$16 sps:$4 sm:$0xff]  }
  0x6d   :  { %709 = vmatpush1.bf16.msra.mxu0 %v2047_v58  ;;  %v2144_v58 = vld [vmem:[#allocation5 + $0x8c] ss:$16 sps:$4 sm:$0xff]  }
  0x6e   :  { %750 = vmatpush1.bf16.msra.mxu1 %v2048_v59  ;;  %710 = vmatprep.subr.bf16.mxu0 %v2049_v60  ;;  %v2139_v59 = vld [vmem:[#allocation5 + $0x80] ss:$16 sps:$4 sm:$0xff]   ;;  %v2142_v60 = vld [vmem:[#allocation5 + $0x88] ss:$16 sps:$4 sm:$0xff]  }
  0x6f   :  { %751 = vmatprep.subr.bf16.mxu1 %v2051_v61  ;;  %v2147_v61 = vld [vmem:[#allocation5 + $0xa4] ss:$16 sps:$4 sm:$0xff]  }
  0x71   :  { %711 = vmatpush1.bf16.msra.mxu0 %v2053_v62  ;;  %v2150_v62 = vld [vmem:[#allocation5 + $0xac] ss:$16 sps:$4 sm:$0xff]  }
  0x72   :  { %752 = vmatpush1.bf16.msra.mxu1 %v2054_v63  ;;  %712 = vmatprep.subr.bf16.mxu0 %v2055_v0  ;;  %v2145_v63 = vld [vmem:[#allocation5 + $0xa0] ss:$16 sps:$4 sm:$0xff]   ;;  %v2148_v0 = vld [vmem:[#allocation5 + $0xa8] ss:$16 sps:$4 sm:$0xff]  }
  0x73   :  { %753 = vmatprep.subr.bf16.mxu1 %v2057_v1  ;;  %v2153_v1 = vld [vmem:[#allocation5 + $0xc4] ss:$16 sps:$4 sm:$0xff]  }
  0x75   :  { %713 = vmatpush1.bf16.msra.mxu0 %v2059_v2  ;;  %v2156_v2 = vld [vmem:[#allocation5 + $0xcc] ss:$16 sps:$4 sm:$0xff]  }
  0x76   :  { %754 = vmatpush1.bf16.msra.mxu1 %v2060_v3  ;;  %764 = vmatprep.subr.bf16.mxu0 %v2067_v4  ;;  %v2151_v3 = vld [vmem:[#allocation5 + $0xc0] ss:$16 sps:$4 sm:$0xff]   ;;  %v2154_v4 = vld [vmem:[#allocation5 + $0xc8] ss:$16 sps:$4 sm:$0xff]  }
  0x77   :  { %1236 = vmatprep.subr.bf16.mxu1 %v2117_v42 }
  0x78   :  { %715 = vmatmul.mubr.bf16.vlgmr.msra.gmra.mrb[0].mxu0 %v1711_v5  ;;  %v2159_v5 = vld [vmem:[#allocation5 + $0xe4] ss:$16 sps:$4 sm:$0xff]  }
  0x79   :  { %756 = vmatmul.mubr.bf16.vlgmr.msra.gmra.mrb[0].mxu1 %v1713_v6  ;;  %765 = vmatpush1.bf16.msra.mxu0 %v2065_v7  ;;  %v2162_v6 = vld [vmem:[#allocation5 + $0xec] ss:$16 sps:$4 sm:$0xff]   ;;  %v2157_v7 = vld [vmem:[#allocation5 + $0xe0] ss:$16 sps:$4 sm:$0xff]  }
  0x7a   :  { %796 = vmatprep.mubr.bf16.mxu0 %v1716_v10  ;;  %766 = vmatprep.subr.bf16.mxu0 %v2070_v8  ;;  %v2160_v8 = vld [vmem:[#allocation5 + $0xe8] ss:$16 sps:$4 sm:$0xff]   ;;  %v2168_v10 = vld [vmem:[#allocation5 + $0x10c] ss:$16 sps:$4 sm:$0xff]  }
  0x7b   :  { %1237 = vmatpush1.bf16.msra.mxu1 %v2115_v41  ;;  %v2211_v41 = vld [vmem:[#allocation7 + $0x40] sm:$0xff]  }
  0x7c   :  { %1238 = vmatprep.subr.bf16.mxu1 %v2123_v45 }
  0x7d   :  { %767 = vmatpush1.bf16.msra.mxu0 %v2068_v11  ;;  %v2163_v11 = vld [vmem:[#allocation5 + $0x100] ss:$16 sps:$4 sm:$0xff]  }
  0x7e   :  { %768 = vmatprep.subr.bf16.mxu0 %v2073_v12  ;;  %v2166_v12 = vld [vmem:[#allocation5 + $0x108] ss:$16 sps:$4 sm:$0xff]  }
  0x7f   :  { %1239 = vmatpush1.bf16.msra.mxu1 %v2121_v47 }
  0x80   :  { %1240 = vmatprep.subr.bf16.mxu1 %v2129_v49 }
  0x81   :  { %769 = vmatpush1.bf16.msra.mxu0 %v2071_v13  ;;  %v2171_v13 = vld [vmem:[#allocation5 + $0x124] ss:$16 sps:$4 sm:$0xff]  }
  0x82   :  { %770 = vmatprep.subr.bf16.mxu0 %v2076_v14  ;;  %v2174_v14 = vld [vmem:[#allocation5 + $0x12c] ss:$16 sps:$4 sm:$0xff]  }
  0x83   :  { %1241 = vmatpush1.bf16.msra.mxu1 %v2127_v51 }
  0x84   :  { %1242 = vmatprep.subr.bf16.mxu1 %v2135_v53 }
  0x85   :  { %771 = vmatpush1.bf16.msra.mxu0 %v2074_v15  ;;  %v2169_v15 = vld [vmem:[#allocation5 + $0x120] ss:$16 sps:$4 sm:$0xff]  }
  0x86   :  { %772 = vmatprep.subr.bf16.mxu0 %v2079_v16  ;;  %v2172_v16 = vld [vmem:[#allocation5 + $0x128] ss:$16 sps:$4 sm:$0xff]  }
  0x87   :  { %1243 = vmatpush1.bf16.msra.mxu1 %v2133_v55  ;;  %v814_v55 = vld [vmem:[%s2453_s2] sm:$0x3] }
  0x88   :  { %1244 = vmatprep.subr.bf16.mxu1 %v2141_v57 }
  0x89   :  { %773 = vmatpush1.bf16.msra.mxu0 %v2077_v17  ;;  %v2177_v17 = vld [vmem:[#allocation5 + $0x144] ss:$16 sps:$4 sm:$0xff]  }
  0x8a   :  { %774 = vmatprep.subr.bf16.mxu0 %v2082_v18  ;;  %v2180_v18 = vld [vmem:[#allocation5 + $0x14c] ss:$16 sps:$4 sm:$0xff]  }
  0x8b   :  { %1245 = vmatpush1.bf16.msra.mxu1 %v2139_v59 }
  0x8c   :  { %1246 = vmatprep.subr.bf16.mxu1 %v2147_v61 }
  0x8d   :  { %775 = vmatpush1.bf16.msra.mxu0 %v2080_v19  ;;  %v2175_v19 = vld [vmem:[#allocation5 + $0x140] ss:$16 sps:$4 sm:$0xff]  }
  0x8e   :  { %776 = vmatprep.subr.bf16.mxu0 %v2085_v20  ;;  %v2178_v20 = vld [vmem:[#allocation5 + $0x148] ss:$16 sps:$4 sm:$0xff]  }
  0x8f   :  { %1247 = vmatpush1.bf16.msra.mxu1 %v2145_v63 }
  0x90   :  { %1248 = vmatprep.subr.bf16.mxu1 %v2153_v1 }
  0x91   :  { %777 = vmatpush1.bf16.msra.mxu0 %v2083_v21  ;;  %v2183_v21 = vld [vmem:[#allocation5 + $0x164] ss:$16 sps:$4 sm:$0xff]  }
  0x92   :  { %778 = vmatprep.subr.bf16.mxu0 %v2088_v22  ;;  %v2186_v22 = vld [vmem:[#allocation5 + $0x16c] ss:$16 sps:$4 sm:$0xff]  }
  0x93   :  { %1249 = vmatpush1.bf16.msra.mxu1 %v2151_v3 }
  0x94   :  { %1250 = vmatprep.subr.bf16.mxu1 %v2159_v5 }
  0x95   :  { %779 = vmatpush1.bf16.msra.mxu0 %v2086_v23  ;;  %v2181_v23 = vld [vmem:[#allocation5 + $0x160] ss:$16 sps:$4 sm:$0xff]  }
  0x96   :  { %780 = vmatprep.subr.bf16.mxu0 %v2091_v24  ;;  %v2184_v24 = vld [vmem:[#allocation5 + $0x168] ss:$16 sps:$4 sm:$0xff]  }
  0x97   :  { %1251 = vmatpush1.bf16.msra.mxu1 %v2157_v7  ;;  %v2214_v7 = vld [vmem:[#allocation7 + $0x8] sm:$0xff]  }
  0x98   :  { %1252 = vmatprep.subr.bf16.mxu1 %v2165_v9  ;;  %v2216_v9 = vld [vmem:[#allocation7 + $0x10] sm:$0xff]  }
  0x99   :  { %781 = vmatpush1.bf16.msra.mxu0 %v2089_v25  ;;  %v2189_v25 = vld [vmem:[#allocation5 + $0x184] ss:$16 sps:$4 sm:$0xff]  }
  0x9a   :  { %782 = vmatprep.subr.bf16.mxu0 %v2094_v26  ;;  %v2192_v26 = vld [vmem:[#allocation5 + $0x18c] ss:$16 sps:$4 sm:$0xff]  }
  0x9b   :  { %1253 = vmatpush1.bf16.msra.mxu1 %v2163_v11  ;;  %v2218_v11 = vld [vmem:[#allocation7 + $0x18] sm:$0xff]  }
  0x9c   :  { %1254 = vmatprep.subr.bf16.mxu1 %v2171_v13  ;;  %v2220_v13 = vld [vmem:[#allocation7 + $0x20] sm:$0xff]  }
  0x9d   :  { %783 = vmatpush1.bf16.msra.mxu0 %v2092_v27  ;;  %v2187_v27 = vld [vmem:[#allocation5 + $0x180] ss:$16 sps:$4 sm:$0xff]  }
  0x9e   :  { %784 = vmatprep.subr.bf16.mxu0 %v2097_v28  ;;  %v2190_v28 = vld [vmem:[#allocation5 + $0x188] ss:$16 sps:$4 sm:$0xff]  }
  0x9f   :  { %1255 = vmatpush1.bf16.msra.mxu1 %v2169_v15  ;;  %v2222_v15 = vld [vmem:[#allocation7 + $0x28] sm:$0xff]  }
  0xa0   :  { %1256 = vmatprep.subr.bf16.mxu1 %v2177_v17  ;;  %v2224_v17 = vld [vmem:[#allocation7 + $0x30] sm:$0xff]  }
  0xa1   :  { %785 = vmatpush1.bf16.msra.mxu0 %v2095_v29  ;;  %v2195_v29 = vld [vmem:[#allocation5 + $0x1a4] ss:$16 sps:$4 sm:$0xff]  }
  0xa2   :  { %786 = vmatprep.subr.bf16.mxu0 %v2100_v30  ;;  %v2198_v30 = vld [vmem:[#allocation5 + $0x1ac] ss:$16 sps:$4 sm:$0xff]  }
  0xa3   :  { %1257 = vmatpush1.bf16.msra.mxu1 %v2175_v19  ;;  %v2226_v19 = vld [vmem:[#allocation7 + $0x38] sm:$0xff]  }
  0xa4   :  { %1258 = vmatprep.subr.bf16.mxu1 %v2183_v21  ;;  %v894_v21 = vld [vmem:[%s2455_s4] sm:$0xf] }
  0xa5   :  { %787 = vmatpush1.bf16.msra.mxu0 %v2098_v31  ;;  %v2193_v31 = vld [vmem:[#allocation5 + $0x1a0] ss:$16 sps:$4 sm:$0xff]  }
  0xa6   :  { %788 = vmatprep.subr.bf16.mxu0 %v2103_v32  ;;  %v2196_v32 = vld [vmem:[#allocation5 + $0x1a8] ss:$16 sps:$4 sm:$0xff]  }
  0xa7   :  { %1259 = vmatpush1.bf16.msra.mxu1 %v2181_v23 }
  0xa8   :  { %1260 = vmatprep.subr.bf16.mxu1 %v2189_v25 }
  0xa9   :  { %789 = vmatpush1.bf16.msra.mxu0 %v2101_v33  ;;  %v2201_v33 = vld [vmem:[#allocation5 + $0x1c4] ss:$16 sps:$4 sm:$0xff]  }
  0xaa   :  { %790 = vmatprep.subr.bf16.mxu0 %v2106_v34  ;;  %v2204_v34 = vld [vmem:[#allocation5 + $0x1cc] ss:$16 sps:$4 sm:$0xff]  }
  0xab   :  { %1261 = vmatpush1.bf16.msra.mxu1 %v2187_v27 }
  0xac   :  { %1262 = vmatprep.subr.bf16.mxu1 %v2195_v29 }
  0xad   :  { %791 = vmatpush1.bf16.msra.mxu0 %v2104_v35  ;;  %v2199_v35 = vld [vmem:[#allocation5 + $0x1c0] ss:$16 sps:$4 sm:$0xff]  }
  0xae   :  { %792 = vmatprep.subr.bf16.mxu0 %v2109_v36  ;;  %v2202_v36 = vld [vmem:[#allocation5 + $0x1c8] ss:$16 sps:$4 sm:$0xff]  }
  0xaf   :  { %1263 = vmatpush1.bf16.msra.mxu1 %v2193_v31 }
  0xb0   :  { %1264 = vmatprep.subr.bf16.mxu1 %v2201_v33 }
  0xb1   :  { %793 = vmatpush1.bf16.msra.mxu0 %v2107_v37  ;;  %v2207_v37 = vld [vmem:[#allocation5 + $0x1e4] ss:$16 sps:$4 sm:$0xff]  }
  0xb2   :  { %794 = vmatprep.subr.bf16.mxu0 %v2112_v38  ;;  %v2210_v38 = vld [vmem:[#allocation5 + $0x1ec] ss:$16 sps:$4 sm:$0xff]  }
  0xb3   :  { %1265 = vmatpush1.bf16.msra.mxu1 %v2199_v35 }
  0xb4   :  { %1266 = vmatprep.subr.bf16.mxu1 %v2207_v37 }
  0xb5   :  { %795 = vmatpush1.bf16.msra.mxu0 %v2110_v39  ;;  %v2205_v39 = vld [vmem:[#allocation5 + $0x1e0] ss:$16 sps:$4 sm:$0xff]  }
  0xb6   :  { %1277 = vmatprep.subr.bf16.mxu0 %v2120_v44 }
  0xb7   :  { %1267 = vmatpush1.bf16.msra.mxu1 %v2205_v39 }
  0xb8   :  { %797 = vmatmul.mubr.bf16.vlgmr.msra.gmra.mrb[4].mxu0 %v1715_v40  ;;  %v2208_v40 = vld [vmem:[#allocation5 + $0x1e8] ss:$16 sps:$4 sm:$0xff]   ;;  %1912 = vmatprep.subr.bf16.mxu1 %v2211_v41  ;;  %v2228_v41 = vld [vmem:[#allocation7 + $0x80] sm:$0xff]  }
  0xb9   :  { %1278 = vmatpush1.bf16.msra.mxu0 %v2118_v43 }
  0xba   :  { %1279 = vmatprep.subr.bf16.mxu0 %v2126_v46 }
  0xbd   :  { %1280 = vmatpush1.bf16.msra.mxu0 %v2124_v48 }
  0xbe   :  { %1281 = vmatprep.subr.bf16.mxu0 %v2132_v50 }
  0xc1   :  { %1282 = vmatpush1.bf16.msra.mxu0 %v2130_v52  ;;  %v816_v52 = vlaneseq }
  0xc2   :  { %1283 = vmatprep.subr.bf16.mxu0 %v2138_v54 }
  0xc3   :  { %v2427_v53 = vshrl.u32 %v816_v52, 7 }
  0xc5   :  { %1284 = vmatpush1.bf16.msra.mxu0 %v2136_v56  ;;  %v818_v54 = vsub.s32 0, %v2427_v53  ;;  %v822_v56 = vsub.s32 1, %v2427_v53  ;;  %v906_v52 = vsub.s32 2, %v2427_v53 }
  0xc6   :  { %1285 = vmatprep.subr.bf16.mxu0 %v2144_v58 }
  0xc7   :  { %v819_v57 = vrot.slane %v814_v55, %v818_v54  ;;  %v823_v59 = vrot.slane %v814_v55, %v822_v56  ;;  %v899_v23 = vrot.slane %v894_v21, %v818_v54  ;;  %v2237_v54 = vld [vmem:[#allocation7 + $0xe8] sm:$0xff]  }
  0xc8   :  { %v2238_v55 = vld [vmem:[#allocation7 + $0xa8] sm:$0xff]  }
  0xc9   :  { %1286 = vmatpush1.bf16.msra.mxu0 %v2142_v60 }
  0xca   :  { %1287 = vmatprep.subr.bf16.mxu0 %v2150_v62 }
  0xcd   :  { %1288 = vmatpush1.bf16.msra.mxu0 %v2148_v0 }
  0xce   :  { %1289 = vmatprep.subr.bf16.mxu0 %v2156_v2 }
  0xd1   :  { %1290 = vmatpush1.bf16.msra.mxu0 %v2154_v4  ;;  %v2212_v4 = vld [vmem:[#allocation7] sm:$0xff]  }
  0xd2   :  { %1291 = vmatprep.subr.bf16.mxu0 %v2162_v6  ;;  %v2213_v6 = vld [vmem:[#allocation7 + $0x48] sm:$0xff]  }
  0xd5   :  { %1292 = vmatpush1.bf16.msra.mxu0 %v2160_v8  ;;  %v2215_v8 = vld [vmem:[#allocation7 + $0x50] sm:$0xff]  }
  0xd6   :  { %1293 = vmatprep.subr.bf16.mxu0 %v2168_v10  ;;  %v2217_v10 = vld [vmem:[#allocation7 + $0x58] sm:$0xff]  }
  0xd9   :  { %1294 = vmatpush1.bf16.msra.mxu0 %v2166_v12  ;;  %v2219_v12 = vld [vmem:[#allocation7 + $0x60] sm:$0xff]  }
  0xda   :  { %1295 = vmatprep.subr.bf16.mxu0 %v2174_v14  ;;  %v2221_v14 = vld [vmem:[#allocation7 + $0x68] sm:$0xff]  }
  0xdd   :  { %1296 = vmatpush1.bf16.msra.mxu0 %v2172_v16  ;;  %v2223_v16 = vld [vmem:[#allocation7 + $0x70] sm:$0xff]  }
  0xde   :  { %1297 = vmatprep.subr.bf16.mxu0 %v2180_v18  ;;  %v2225_v18 = vld [vmem:[#allocation7 + $0x78] sm:$0xff]  }
  0xe1   :  { %1298 = vmatpush1.bf16.msra.mxu0 %v2178_v20  ;;  %v2227_v20 = vld [vmem:[#allocation7 + $0xc0] sm:$0xff]  }
  0xe2   :  { %1299 = vmatprep.subr.bf16.mxu0 %v2186_v22  ;;  %v910_v22 = vsub.s32 3, %v2427_v53 }
  0xe4   :  { %v911_v25 = vrot.slane %v894_v21, %v910_v22  ;;  %v1911_v22 = vld [vmem:[%s2459_s8] ss:$0 sm:$0xff] }
  0xe5   :  { %1300 = vmatpush1.bf16.msra.mxu0 %v2184_v24  ;;  %v903_v24 = vrot.slane %v894_v21, %v822_v56  ;;  %v907_v56 = vrot.slane %v894_v21, %v906_v52 }
  0xe6   :  { %1301 = vmatprep.subr.bf16.mxu0 %v2192_v26 }
  0xe9   :  { %1302 = vmatpush1.bf16.msra.mxu0 %v2190_v28 }
  0xea   :  { %1303 = vmatprep.subr.bf16.mxu0 %v2198_v30 }
  0xed   :  { %1304 = vmatpush1.bf16.msra.mxu0 %v2196_v32 }
  0xee   :  { %1305 = vmatprep.subr.bf16.mxu0 %v2204_v34 }
  0xf1   :  { %1306 = vmatpush1.bf16.msra.mxu0 %v2202_v36 }
  0xf2   :  { %1307 = vmatprep.subr.bf16.mxu0 %v2210_v38 }
  0xf5   :  { %1308 = vmatpush1.bf16.msra.mxu0 %v2208_v40 }
 0x14b   :  { %v716_v42 = vpop.f32.mrb[0].mxu0 }
 0x14c   :  { %v757_v43 = vpop.f32.mrb[0].mxu1  ;;  %v718_v45 = vpop.f32.mrb[1].mxu0 }
 0x14d   :  { %v758_v44 = vadd.f32 %v757_v43, %v716_v42  ;;  %v759_v46 = vpop.f32.mrb[1].mxu1  ;;  %v720_v48 = vpop.f32.mrb[2].mxu0  ;;  %v2229_v43 = vld [vmem:[#allocation7 + $0xc8] sm:$0xff]  }
 0x14e   :  { %v760_v47 = vadd.f32 %v759_v46, %v718_v45  ;;  %v761_v49 = vpop.f32.mrb[2].mxu1  ;;  %v721_v50 = vpop.f32.mrb[3].mxu0  ;;  %v2230_v45 = vld [vmem:[#allocation7 + $0x88] sm:$0xff]   ;;  %v2231_v46 = vld [vmem:[#allocation7 + $0xd0] sm:$0xff]   ;;  %v2233_v48 = vld [vmem:[#allocation7 + $0xd8] sm:$0xff]  }
 0x14f   :  { %v762_v51 = vpop.f32.mrb[3].mxu1  ;;  %v2234_v49 = vld [vmem:[#allocation7 + $0x98] sm:$0xff]   ;;  %v2235_v50 = vld [vmem:[#allocation7 + $0xe0] sm:$0xff]  }
 0x150   :  { %v2236_v51 = vld [vmem:[#allocation7 + $0xa0] sm:$0xff]  }
 0x18b   :  { %v798_v58 = vpop.f32.mrb[4].mxu0 }
 0x18c   :  { %v799_v60 = vadd.f32 %v798_v58, %v758_v44  ;;  %v800_v61 = vpop.f32.mrb[5].mxu0  ;;  %v2240_v58 = vld [vmem:[#allocation7 + $0xb0] sm:$0xff]  }
 0x18d   :  { %v801_v62 = vadd.f32 %v800_v61, %v760_v47  ;;  %v802_v63 = vpop.f32.mrb[6].mxu0  ;;  %v2232_v47 = vld [vmem:[#allocation7 + $0x90] sm:$0xff]   ;;  %v2242_v61 = vld [vmem:[#allocation7 + $0xb8] sm:$0xff]  }
 0x18e   :  { %v826_v0 = vadd.f32 %v819_v57, %v799_v60  ;;  %v803_v1 = vpop.f32.mrb[7].mxu0  ;;  %v2239_v57 = vld [vmem:[#allocation7 + $0xf0] sm:$0xff]   ;;  %v2241_v60 = vld [vmem:[#allocation7 + $0xf8] sm:$0xff]  }
 0x18f   :  { %v827_v2 = vadd.f32 %v823_v59, %v801_v62 }
 0x190   :  { %v828_v5 = vpack.c.bf16 %v826_v0, %v826_v0 }
 0x191   :  { %v829_v3 = vpack.c.bf16 %v827_v2, %v827_v2 }
 0x193   :  { %1268 = vmatprep.mubr.bf16.mxu1 %v829_v3  ;;  %1309 = vmatprep.mubr.bf16.mxu0 %v829_v3 }
 0x194   :  { %1269 = vmatmul.mubr.bf16.vlgmr.msra.gmra.mrb[4].mxu1 %v828_v5  ;;  %1310 = vmatmul.mubr.bf16.vlgmr.msra.gmra.mrb[8].mxu0 %v828_v5 }
 0x195   :  { %1913 = vmatpush3.bf16.msra.mxu1 %v2212_v4  ;;  %v1877_v4 = vld [vmem:[%s2457_s6] ss:$0 sm:$0xff] }
 0x196   :  { %1914 = vmatprep.subr.bf16.mxu1 %v2213_v6 }
 0x199   :  { %1915 = vmatpush3.bf16.msra.mxu1 %v2214_v7 }
 0x19a   :  { %1916 = vmatprep.subr.bf16.mxu1 %v2215_v8 }
 0x19d   :  { %1917 = vmatpush3.bf16.msra.mxu1 %v2216_v9 }
 0x19e   :  { %1918 = vmatprep.subr.bf16.mxu1 %v2217_v10 }
 0x1a1   :  { %1919 = vmatpush3.bf16.msra.mxu1 %v2218_v11 }
 0x1a2   :  { %1920 = vmatprep.subr.bf16.mxu1 %v2219_v12 }
 0x1a5   :  { %1921 = vmatpush3.bf16.msra.mxu1 %v2220_v13 }
 0x1a6   :  { %1922 = vmatprep.subr.bf16.mxu1 %v2221_v14 }
 0x1a9   :  { %1923 = vmatpush3.bf16.msra.mxu1 %v2222_v15 }
 0x1aa   :  { %1924 = vmatprep.subr.bf16.mxu1 %v2223_v16 }
 0x1ad   :  { %1925 = vmatpush3.bf16.msra.mxu1 %v2224_v17 }
 0x1ae   :  { %1926 = vmatprep.subr.bf16.mxu1 %v2225_v18 }
 0x1b1   :  { %1927 = vmatpush3.bf16.msra.mxu1 %v2226_v19 }
 0x1b2   :  { %1934 = vmatprep.subr.bf16.mxu1 %v2227_v20  ;;  %v1910_v20 = vld [vmem:[%s2458_s7] ss:$0 sm:$0xff] }
 0x267   :  { %v1270_v26 = vpop.f32.mrb[4].mxu1  ;;  %v1311_v27 = vpop.f32.mrb[8].mxu0 }
 0x268   :  { %v1271_v28 = vadd.f32 %v1270_v26, %v899_v23  ;;  %v1272_v29 = vpop.f32.mrb[5].mxu1  ;;  %v1313_v30 = vpop.f32.mrb[9].mxu0  ;;  %v1312_v59 = vadd.f32 %v1311_v27, %v907_v56 }
 0x269   :  { %v1273_v31 = vadd.f32 %v1272_v29, %v903_v24  ;;  %v1314_v32 = vadd.f32 %v1313_v30, %v911_v25  ;;  %v1274_v33 = vpop.f32.mrb[6].mxu1  ;;  %v1315_v34 = vpop.f32.mrb[10].mxu0 }
 0x26a   :  { %v1318_v35 = vmax.f32 %v1271_v28, 0.0  ;;  %v1275_v36 = vpop.f32.mrb[7].mxu1  ;;  %v1316_v37 = vpop.f32.mrb[11].mxu0  ;;  %v1320_v62 = vmax.f32 %v1312_v59, 0.0 }
 0x26b   :  { %v1319_v38 = vmax.f32 %v1273_v31, 0.0  ;;  %v1321_v39 = vmax.f32 %v1314_v32, 0.0 }
 0x26c   :  { %v1322_v42 = vpack.c.bf16 %v1318_v35, %v1318_v35  ;;  %v1324_v63 = vpack.c.bf16 %v1320_v62, %v1320_v62 }
 0x26d   :  { %v1323_v40 = vpack.c.bf16 %v1319_v38, %v1319_v38  ;;  %v1325_v44 = vpack.c.bf16 %v1321_v39, %v1321_v39 }
 0x26f   :  { %1621 = vmatprep.mubr.bf16.mxu1 %v1323_v40 }
 0x270   :  { %1622 = vmatmul.mubr.bf16.vlgmr.msra.gmra.mrb[8].mxu1 %v1322_v42 }
 0x271   :  { %1935 = vmatpush3.bf16.msra.mxu1 %v2228_v41  ;;  %1661 = vmatprep.mubr.bf16.mxu1 %v1325_v44 }
 0x272   :  { %1936 = vmatprep.subr.bf16.mxu1 %v2229_v43 }
 0x275   :  { %1937 = vmatpush3.bf16.msra.mxu1 %v2230_v45 }
 0x276   :  { %1938 = vmatprep.subr.bf16.mxu1 %v2231_v46 }
 0x279   :  { %1939 = vmatpush3.bf16.msra.mxu1 %v2232_v47 }
 0x27a   :  { %1940 = vmatprep.subr.bf16.mxu1 %v2233_v48 }
 0x27d   :  { %1941 = vmatpush3.bf16.msra.mxu1 %v2234_v49 }
 0x27e   :  { %1942 = vmatprep.subr.bf16.mxu1 %v2235_v50 }
 0x281   :  { %1943 = vmatpush3.bf16.msra.mxu1 %v2236_v51 }
 0x282   :  { %1944 = vmatprep.subr.bf16.mxu1 %v2237_v54 }
 0x285   :  { %1945 = vmatpush3.bf16.msra.mxu1 %v2238_v55 }
 0x286   :  { %1946 = vmatprep.subr.bf16.mxu1 %v2239_v57 }
 0x289   :  { %1947 = vmatpush3.bf16.msra.mxu1 %v2240_v58 }
 0x28a   :  { %1948 = vmatprep.subr.bf16.mxu1 %v2241_v60 }
 0x28d   :  { %1949 = vmatpush3.bf16.msra.mxu1 %v2242_v61 }
 0x290   :  { %1662 = vmatmul.mubr.bf16.vlgmr.msra.gmra.mrb[12].mxu1 %v1324_v63 }
 0x343   :  { %v1928_v53 = vpop.f32.mrb[8].mxu1 }
 0x344   :  { %v1929_v0 = vpop.f32.mrb[9].mxu1 }
 0x345   :  { %v1930_v1 = vadd.f32 %v1929_v0, %v1928_v53  ;;  %v1931_v2 = vpop.f32.mrb[10].mxu1 }
 0x346   :  { %v1932_v3 = vpop.f32.mrb[11].mxu1 }
 0x347   :  { %v1624_v7 = vadd.f32 %v1930_v1, %v1877_v4 }
 0x363   :  { %v1950_v5 = vpop.f32.mrb[12].mxu1 }
 0x364   :  { %v1951_v6 = vpop.f32.mrb[13].mxu1 }
 0x365   :  { %v1952_v8 = vadd.f32 %v1951_v6, %v1950_v5  ;;  %v1953_v9 = vpop.f32.mrb[14].mxu1 }
 0x366   :  { %v1954_v10 = vpop.f32.mrb[15].mxu1 }
 0x367   :  { %v1664_v11 = vadd.f32 %v1952_v8, %v1624_v7 }
 0x369   :  { %1669 = vadd.xlane.f32.xlu0 %v1664_v11 }
 0x3f6   :  { %v1670_v12 = vpop.xlane.xlu0 %1669 }
 0x3f7   :  { %v1672_v13 = vmul.f32 0.0078125, %v1670_v12 }
 0x3f9   :  { %v1673_v14 = vsub.f32 %v1664_v11, %v1672_v13 }
 0x3fb   :  { %v1674_v15 = vmul.f32 %v1673_v14, %v1673_v14 }
 0x3fd   :  { %1675 = vadd.xlane.f32.xlu0 %v1674_v15 }
 0x48a   :  { %v1676_v16 = vpop.xlane.xlu0 %1675 }
 0x48b   :  { %v1677_v17 = vmul.f32 0.0078125, %v1676_v16 }
 0x48d   :  { %v1678_v18 = vadd.f32 1e-05, %v1677_v17 }
 0x48f   :  { %2243 = vrsqrt.f32 %v1678_v18 }
 0x499   :  { %v2244_v19 = vpop.eup %2243 }
 0x49a   :  { %v1680_v21 = vmul.f32 %v2244_v19, %v1673_v14 }
 0x49c   :  { %v1688_v23 = vmul.f32 %v1910_v20, %v1680_v21 }
 0x49e   :  { %v1696_v24 = vadd.f32 %v1911_v22, %v1688_v23 }
 0x4a0   :  { %v1697_v25 = vmax.f32 %v1696_v24, 0.0 }
 0x4a2   :  { %v1698_v26 = vmul.f32 %v1697_v25, %v1697_v25 }
 0x4a4   :  { %1699 = vadd.xlane.f32.xlu1 %v1698_v26 }
 0x531   :  { %v1700_v27 = vpop.xlane.xlu1 %1699 }
 0x532   :  { %v1701_v28 = vmax.f32 %v1700_v27, 1e-24 }
 0x534   :  { %2245 = vrsqrt.f32 %v1701_v28 }
 0x53e   :  { %v2246_v29 = vpop.eup %2245 }
 0x53f   :  { %v1703_v30 = vmul.f32 %v2246_v29, %v1697_v25 }
 0x541   :  { %1704 = vst [vmem:[%s2460_s9] sm:$0xff] %v1703_v30 }
 0x542   :  { %1709 = vsyncpa [#allocation4], 1 }
 0x543   :  { %1710 = vsyncpa [#allocation6], 1 }

</bundles_post_ra>
